<compile_context>
chip_gen: v5e
topology: v5e:2x2
jax: 0.10.0
libtpu: 0.0.40
codegen_flags: <defaults>
</compile_context>

<pallas_src>
import jax
import jax.numpy as jnp
from jax.experimental import pallas as pl
from jax.experimental.pallas import tpu as pltpu


def _propagator_kernel(ain_ref, aout_ref, sin_ref, sout_ref, scur_ref,
                       w_in_ref, w_out_ref, w_cur_rz_ref, w_cur_t_ref,
                       b_ref, out_ref):
    # Per-grid-step shapes:
    #   ain/aout   : [TB, N, NE]          (matmul dtype, possibly bf16)
    #   sin/sout   : [TB, NE, D]
    #   scur       : [TB, N, D]
    #   w_in/w_out : [D, 3D]   w_cur_rz : [D, 2D]   w_cur_t : [D, D]
    #   b          : [1, 3D]   out      : [TB, N, D] (f32)
    TB, N, _ = ain_ref.shape
    D = scur_ref.shape[2]
    M = TB * N

    # Per-batch message aggregation (torch.bmm) on the MXU; f32 accumulation.
    a_in = jnp.einsum('bnm,bmd->bnd', ain_ref[...], sin_ref[...],
                      preferred_element_type=jnp.float32).reshape(M, D)
    a_out = jnp.einsum('bnm,bmd->bnd', aout_ref[...], sout_ref[...],
                       preferred_element_type=jnp.float32).reshape(M, D)
    # NOTE: the (TB, N, D) -> (TB*N, D) reshape is free only when N % 8 == 0.
    scur = scur_ref[...].astype(jnp.float32).reshape(M, D)

    # Shared wide preactivation: [r | z | t] lanes in one [M, 3D] slab.
    #   pre = a_in @ [Wr_in|Wz_in|Wt_in] + a_out @ [Wr_out|Wz_out|Wt_out] + [br|bz|bt]
    pre = (jnp.dot(a_in, w_in_ref[...], preferred_element_type=jnp.float32)
           + jnp.dot(a_out, w_out_ref[...], preferred_element_type=jnp.float32)
           + b_ref[...])

    # Reset / update gates (fused): sigmoid on the EUP.
    # Lane slices are clean when 3*D <= 128 (whole row in one vreg) or D % 128 == 0.
    rz = jax.nn.sigmoid(
        pre[:, :2 * D]
        + jnp.dot(scur, w_cur_rz_ref[...], preferred_element_type=jnp.float32))
    r = rz[:, :D]
    z = rz[:, D:]

    # Candidate state: tanh on the EUP; reset-gated state contribution.
    h_hat = jnp.tanh(
        pre[:, 2 * D:]
        + jnp.dot(r * scur, w_cur_t_ref[...], preferred_element_type=jnp.float32))

    # (1 - z) * scur + z * h_hat  ==  scur + z * (h_hat - scur)
    out = scur + z * (h_hat - scur)
    out_ref[...] = out.reshape(TB, N, D).astype(out_ref.dtype)


def _vmem_plan(B, N, NE, D, in_itemsize, batch_block=None):
    """Pick the per-step batch block and a VMEM limit for the compiler.

    Counts double-buffered input/output blocks plus the live f32 intermediates
    the kernel materializes, against a budget that fits v7x's 64 MiB VMEM.
    """
    # Double-buffered per-batch-element input + output block bytes.
    io_per_b = (2 * N * NE + 2 * NE * D + N * D) * in_itemsize + N * D * 4
    # Live f32 intermediates per batch element:
    # a_in, a_out, scur, pre(3D), rz(2D), h_hat, blend  ~ 12 * N * D floats.
    scratch_per_b = 12 * N * D * 4
    per_b = 2 * io_per_b + scratch_per_b
    # Weights / bias, double-buffered by the default pipeline.
    w_bytes = 2 * (2 * D * 3 * D + D * 2 * D + D * D + 3 * D) * 4

    budget = 40 * 1024 * 1024
    if batch_block is None:
        tb_mem = max(1, (budget - w_bytes) // per_b)
        # >= min(B, 8) grid steps so DMA pipelines (>= 4 per TC on v7x megacore).
        tb_steps = max(1, B // min(B, 8))
        tb = int(min(tb_mem, tb_steps, B))
        while B % tb:
            tb -= 1
    else:
        tb = int(batch_block)
        assert B % tb == 0, "batch_block must divide B"

    vmem_est = w_bytes + tb * per_b
    vmem_limit = int(min(max(vmem_est + (8 << 20), 32 << 20), 56 << 20))
    return tb, vmem_limit


def propagator_pallas(state_in, state_out, state_cur, A, params,
                      n_node, n_edge_types, *, batch_block=None,
                      matmul_dtype=jnp.float32):
    B, N, D = state_cur.shape
    NE = n_node * n_edge_types
    assert N == n_node
    assert state_in.shape == (B, NE, D) and state_out.shape == (B, NE, D)
    assert A.shape == (B, N, 2 * NE)

    wr, br, wz, bz, wt, bt = params  # w*: [3D, D] (pre-transposed), b*: [1, D]

    # --- one-time weight prep (free relative to the per-step kernel) ---
    w_in = jnp.concatenate([wr[:D], wz[:D], wt[:D]], axis=1)                 # [D, 3D]
    w_out = jnp.concatenate([wr[D:2 * D], wz[D:2 * D], wt[D:2 * D]], axis=1)  # [D, 3D]
    w_cur_rz = jnp.concatenate([wr[2 * D:], wz[2 * D:]], axis=1)              # [D, 2D]
    w_cur_t = wt[2 * D:]                                                      # [D, D]
    b_all = jnp.concatenate([br, bz, bt], axis=1)                             # [1, 3D]

    # --- boundary casts (bf16 halves HBM traffic of the dominant inputs) ---
    s_in = state_in.astype(matmul_dtype)
    s_out = state_out.astype(matmul_dtype)
    s_cur = state_cur.astype(matmul_dtype)
    A_cast = A.astype(matmul_dtype)

    in_itemsize = jnp.dtype(matmul_dtype).itemsize
    TB, vmem_limit = _vmem_plan(B, N, NE, D, in_itemsize, batch_block)
    grid = (B // TB,)

    # A handling: avoid materializing A_in/A_out when lane tiling lets us
    # address the halves directly (block index 0 / 1 on the last axis).
    if NE % 128 == 0:
        a_in_arg, a_out_arg = A_cast, A_cast
        a_in_spec = pl.BlockSpec((TB, N, NE), lambda bi: (bi, 0, 0))
        a_out_spec = pl.BlockSpec((TB, N, NE), lambda bi: (bi, 0, 1))
    else:
        a_in_arg = A_cast[:, :, :NE]
        a_out_arg = A_cast[:, :, NE:]
        a_in_spec = pl.BlockSpec((TB, N, NE), lambda bi: (bi, 0, 0))
        a_out_spec = pl.BlockSpec((TB, N, NE), lambda bi: (bi, 0, 0))

    out = pl.pallas_call(
        _propagator_kernel,
        out_shape=jax.ShapeDtypeStruct((B, N, D), jnp.float32),
        grid=grid,
        in_specs=[
            a_in_spec,                                            # A_in
            a_out_spec,                                           # A_out
            pl.BlockSpec((TB, NE, D), lambda bi: (bi, 0, 0)),     # state_in
            pl.BlockSpec((TB, NE, D), lambda bi: (bi, 0, 0)),     # state_out
            pl.BlockSpec((TB, N, D), lambda bi: (bi, 0, 0)),      # state_cur
            pl.BlockSpec((D, 3 * D), lambda bi: (0, 0)),          # W_in
            pl.BlockSpec((D, 3 * D), lambda bi: (0, 0)),          # W_out
            pl.BlockSpec((D, 2 * D), lambda bi: (0, 0)),          # W_cur_rz
            pl.BlockSpec((D, D), lambda bi: (0, 0)),              # W_cur_t
            pl.BlockSpec((1, 3 * D), lambda bi: (0, 0)),          # b_all
        ],
        out_specs=pl.BlockSpec((TB, N, D), lambda bi: (bi, 0, 0)),
        compiler_params=pltpu.CompilerParams(
            dimension_semantics=("parallel",),
            vmem_limit_bytes=vmem_limit),
    )(a_in_arg, a_out_arg, s_in, s_out, s_cur,
      w_in, w_out, w_cur_rz, w_cur_t, b_all)
    return out


def propagator_ref(state_in, state_out, state_cur, A, params, n_node, n_edge_types):
    """Pure-JAX reference mirroring the PyTorch forward."""
    wr, br, wz, bz, wt, bt = params
    NE = n_node * n_edge_types
    A_in = A[:, :, :NE].astype(jnp.float32)
    A_out = A[:, :, NE:].astype(jnp.float32)
    a_in = jnp.einsum('bnm,bmd->bnd', A_in, state_in)
    a_out = jnp.einsum('bnm,bmd->bnd', A_out, state_out)
    a = jnp.concatenate([a_in, a_out, state_cur], axis=2)
    r = jax.nn.sigmoid(a @ wr + br)
    z = jax.nn.sigmoid(a @ wz + bz)
    joined = jnp.concatenate([a_in, a_out, r * state_cur], axis=2)
    h_hat = jnp.tanh(joined @ wt + bt)
    return (1.0 - z) * state_cur + z * h_hat


if __name__ == "__main__":
    # Small, module-consistent shapes.
    B = 2
    state_dim = 32
    n_node = 8
    n_edge_types = 2
    NE = n_node * n_edge_types

    key = jax.random.PRNGKey(0)
    ks = jax.random.split(key, 10)

    state_in = jax.random.normal(ks[0], (B, NE, state_dim), jnp.float32)
    state_out = jax.random.normal(ks[1], (B, NE, state_dim), jnp.float32)
    state_cur = jax.random.normal(ks[2], (B, n_node, state_dim), jnp.float32)
    A = jax.random.uniform(ks[3], (B, n_node, 2 * NE), jnp.float32)

    # nn.Linear(state_dim*3, state_dim) x3, stored pre-transposed [3D, D] + bias [1, D].
    scale = 1.0 / jnp.sqrt(3.0 * state_dim)
    wr = jax.random.normal(ks[4], (3 * state_dim, state_dim), jnp.float32) * scale
    br = jax.random.normal(ks[5], (1, state_dim), jnp.float32) * scale
    wz = jax.random.normal(ks[6], (3 * state_dim, state_dim), jnp.float32) * scale
    bz = jax.random.normal(ks[7], (1, state_dim), jnp.float32) * scale
    wt = jax.random.normal(ks[8], (3 * state_dim, state_dim), jnp.float32) * scale
    bt = jax.random.normal(ks[9], (1, state_dim), jnp.float32) * scale
    params = (wr, br, wz, bz, wt, bt)

    ref = propagator_ref(state_in, state_out, state_cur, A, params,
                         n_node, n_edge_types)

    # f32 path: exact check against the reference.
    out_f32 = propagator_pallas(state_in, state_out, state_cur, A, params,
                                n_node, n_edge_types,
                                matmul_dtype=jnp.float32)
    out_f32 = jax.block_until_ready(out_f32)
    assert out_f32.shape == (B, n_node, state_dim)
    assert jnp.allclose(out_f32, ref, atol=1e-5, rtol=1e-5), "f32 mismatch vs reference"

    # bf16-fed-MXU path (halved HBM traffic): loose tolerance vs the f32 reference.
    out_bf16 = propagator_pallas(state_in, state_out, state_cur, A, params,
                                 n_node, n_edge_types,
                                 matmul_dtype=jnp.bfloat16)
    out_bf16 = jax.block_until_ready(out_bf16)
    assert out_bf16.shape == (B, n_node, state_dim)
    assert jnp.allclose(out_bf16, ref, atol=1e-1, rtol=1e-1), "bf16 mismatch vs reference"

    print("KERNEL_OK")
</pallas_src>

<mosaic_0001>
module attributes {stable_mosaic.version = 11 : i64} {
  func.func @_propagator_kernel(%arg0: i32, %arg1: memref<1x8x16xf32, #tpu.memory_space<vmem>>, %arg2: memref<1x8x16xf32, #tpu.memory_space<vmem>>, %arg3: memref<1x16x32xf32, #tpu.memory_space<vmem>>, %arg4: memref<1x16x32xf32, #tpu.memory_space<vmem>>, %arg5: memref<1x8x32xf32, #tpu.memory_space<vmem>>, %arg6: memref<32x96xf32, #tpu.memory_space<vmem>>, %arg7: memref<32x96xf32, #tpu.memory_space<vmem>>, %arg8: memref<32x64xf32, #tpu.memory_space<vmem>>, %arg9: memref<32x32xf32, #tpu.memory_space<vmem>>, %arg10: memref<1x96xf32, #tpu.memory_space<vmem>>, %arg11: memref<1x8x32xf32, #tpu.memory_space<vmem>>) attributes {dimension_semantics = [#tpu.dimension_semantics<parallel>], iteration_bounds = array<i64: 2>, scalar_prefetch = 0 : i64, scratch_operands = 0 : i64, tpu.core_type = #tpu.core_type<tc>, window_params = [{transform_indices = @transform_0, window_bounds = array<i64: 1, 8, 16>}, {transform_indices = @transform_1, window_bounds = array<i64: 1, 8, 16>}, {transform_indices = @transform_2, window_bounds = array<i64: 1, 16, 32>}, {transform_indices = @transform_3, window_bounds = array<i64: 1, 16, 32>}, {transform_indices = @transform_4, window_bounds = array<i64: 1, 8, 32>}, {pipeline_mode = #tpu.pipeline_mode<synchronous>, transform_indices = @transform_5, window_bounds = array<i64: 32, 96>}, {pipeline_mode = #tpu.pipeline_mode<synchronous>, transform_indices = @transform_6, window_bounds = array<i64: 32, 96>}, {pipeline_mode = #tpu.pipeline_mode<synchronous>, transform_indices = @transform_7, window_bounds = array<i64: 32, 64>}, {pipeline_mode = #tpu.pipeline_mode<synchronous>, transform_indices = @transform_8, window_bounds = array<i64: 32, 32>}, {pipeline_mode = #tpu.pipeline_mode<synchronous>, transform_indices = @transform_9, window_bounds = array<i64: 1, 96>}, {transform_indices = @transform_10, window_bounds = array<i64: 1, 8, 32>}]} {
    %c0 = arith.constant 0 : index
    %c0_0 = arith.constant 0 : index
    %c0_1 = arith.constant 0 : index
    %0 = vector.load %arg1[%c0, %c0_0, %c0_1] : memref<1x8x16xf32, #tpu.memory_space<vmem>>, vector<1x8x16xf32>
    %c0_2 = arith.constant 0 : index
    %c0_3 = arith.constant 0 : index
    %c0_4 = arith.constant 0 : index
    %1 = vector.load %arg3[%c0_2, %c0_3, %c0_4] : memref<1x16x32xf32, #tpu.memory_space<vmem>>, vector<1x16x32xf32>
    "tpu.trace_start"() <{level = 10 : i32, message = "bnm,bmd->bnd"}> : () -> ()
    %cst = arith.constant dense<0.000000e+00> : vector<1x8x32xf32>
    %2 = tpu.matmul %0, %1, %cst {dimension_numbers = #tpu.dot_dimension_numbers<[2], [1], [1], [2], [0, 0, 0, 1, 1, 2], [0], [0]>} : vector<1x8x16xf32>, vector<1x16x32xf32>, vector<1x8x32xf32> -> vector<1x8x32xf32>
    "tpu.trace_stop"() : () -> ()
    %3 = vector.shape_cast %2 : vector<1x8x32xf32> to vector<8x32xf32>
    %c0_5 = arith.constant 0 : index
    %c0_6 = arith.constant 0 : index
    %c0_7 = arith.constant 0 : index
    %4 = vector.load %arg2[%c0_5, %c0_6, %c0_7] : memref<1x8x16xf32, #tpu.memory_space<vmem>>, vector<1x8x16xf32>
    %c0_8 = arith.constant 0 : index
    %c0_9 = arith.constant 0 : index
    %c0_10 = arith.constant 0 : index
    %5 = vector.load %arg4[%c0_8, %c0_9, %c0_10] : memref<1x16x32xf32, #tpu.memory_space<vmem>>, vector<1x16x32xf32>
    "tpu.trace_start"() <{level = 10 : i32, message = "bnm,bmd->bnd"}> : () -> ()
    %cst_11 = arith.constant dense<0.000000e+00> : vector<1x8x32xf32>
    %6 = tpu.matmul %4, %5, %cst_11 {dimension_numbers = #tpu.dot_dimension_numbers<[2], [1], [1], [2], [0, 0, 0, 1, 1, 2], [0], [0]>} : vector<1x8x16xf32>, vector<1x16x32xf32>, vector<1x8x32xf32> -> vector<1x8x32xf32>
    "tpu.trace_stop"() : () -> ()
    %7 = vector.shape_cast %6 : vector<1x8x32xf32> to vector<8x32xf32>
    %c0_12 = arith.constant 0 : index
    %c0_13 = arith.constant 0 : index
    %c0_14 = arith.constant 0 : index
    %8 = vector.load %arg5[%c0_12, %c0_13, %c0_14] : memref<1x8x32xf32, #tpu.memory_space<vmem>>, vector<1x8x32xf32>
    %9 = vector.shape_cast %8 : vector<1x8x32xf32> to vector<8x32xf32>
    %c0_15 = arith.constant 0 : index
    %c0_16 = arith.constant 0 : index
    %10 = vector.load %arg6[%c0_15, %c0_16] : memref<32x96xf32, #tpu.memory_space<vmem>>, vector<32x96xf32>
    %cst_17 = arith.constant dense<0.000000e+00> : vector<8x96xf32>
    %11 = tpu.matmul %3, %10, %cst_17 {dimension_numbers = #tpu.dot_dimension_numbers<[1], [0], [0], [1], [0, 0, 1, 1], [], []>} : vector<8x32xf32>, vector<32x96xf32>, vector<8x96xf32> -> vector<8x96xf32>
    %c0_18 = arith.constant 0 : index
    %c0_19 = arith.constant 0 : index
    %12 = vector.load %arg7[%c0_18, %c0_19] : memref<32x96xf32, #tpu.memory_space<vmem>>, vector<32x96xf32>
    %cst_20 = arith.constant dense<0.000000e+00> : vector<8x96xf32>
    %13 = tpu.matmul %7, %12, %cst_20 {dimension_numbers = #tpu.dot_dimension_numbers<[1], [0], [0], [1], [0, 0, 1, 1], [], []>} : vector<8x32xf32>, vector<32x96xf32>, vector<8x96xf32> -> vector<8x96xf32>
    %14 = arith.addf %11, %13 : vector<8x96xf32>
    %c0_21 = arith.constant 0 : index
    %c0_22 = arith.constant 0 : index
    %15 = vector.load %arg10[%c0_21, %c0_22] : memref<1x96xf32, #tpu.memory_space<vmem>>, vector<1x96xf32>
    %16 = vector.broadcast %15 : vector<1x96xf32> to vector<8x96xf32>
    %17 = arith.addf %14, %16 : vector<8x96xf32>
    %18 = vector.extract_strided_slice %17 {offsets = [0, 0], sizes = [8, 64], strides = [1, 1]} : vector<8x96xf32> to vector<8x64xf32>
    %c0_23 = arith.constant 0 : index
    %c0_24 = arith.constant 0 : index
    %19 = vector.load %arg8[%c0_23, %c0_24] : memref<32x64xf32, #tpu.memory_space<vmem>>, vector<32x64xf32>
    %cst_25 = arith.constant dense<0.000000e+00> : vector<8x64xf32>
    %20 = tpu.matmul %9, %19, %cst_25 {dimension_numbers = #tpu.dot_dimension_numbers<[1], [0], [0], [1], [0, 0, 1, 1], [], []>} : vector<8x32xf32>, vector<32x64xf32>, vector<8x64xf32> -> vector<8x64xf32>
    %21 = arith.addf %18, %20 : vector<8x64xf32>
    %22 = arith.negf %21 : vector<8x64xf32>
    %23 = math.exp %22 : vector<8x64xf32>
    %cst_26 = arith.constant 1.000000e+00 : f32
    %24 = vector.broadcast %cst_26 : f32 to vector<8x64xf32>
    %25 = arith.addf %24, %23 : vector<8x64xf32>
    %26 = arith.divf %24, %25 : vector<8x64xf32>
    %27 = vector.extract_strided_slice %26 {offsets = [0, 0], sizes = [8, 32], strides = [1, 1]} : vector<8x64xf32> to vector<8x32xf32>
    %28 = vector.extract_strided_slice %26 {offsets = [0, 32], sizes = [8, 32], strides = [1, 1]} : vector<8x64xf32> to vector<8x32xf32>
    %29 = vector.extract_strided_slice %17 {offsets = [0, 64], sizes = [8, 32], strides = [1, 1]} : vector<8x96xf32> to vector<8x32xf32>
    %30 = arith.mulf %27, %9 : vector<8x32xf32>
    %c0_27 = arith.constant 0 : index
    %c0_28 = arith.constant 0 : index
    %31 = vector.load %arg9[%c0_27, %c0_28] : memref<32x32xf32, #tpu.memory_space<vmem>>, vector<32x32xf32>
    %cst_29 = arith.constant dense<0.000000e+00> : vector<8x32xf32>
    %32 = tpu.matmul %30, %31, %cst_29 {dimension_numbers = #tpu.dot_dimension_numbers<[1], [0], [0], [1], [0, 0, 1, 1], [], []>} : vector<8x32xf32>, vector<32x32xf32>, vector<8x32xf32> -> vector<8x32xf32>
    %33 = arith.addf %29, %32 : vector<8x32xf32>
    %34 = math.tanh %33 : vector<8x32xf32>
    %35 = arith.subf %34, %9 : vector<8x32xf32>
    %36 = arith.mulf %28, %35 : vector<8x32xf32>
    %37 = arith.addf %9, %36 : vector<8x32xf32>
    %38 = vector.shape_cast %37 : vector<8x32xf32> to vector<1x8x32xf32>
    %c0_30 = arith.constant 0 : index
    %c0_31 = arith.constant 0 : index
    %c0_32 = arith.constant 0 : index
    %39 = vector.load %arg11[%c0_30, %c0_31, %c0_32] : memref<1x8x32xf32, #tpu.memory_space<vmem>>, vector<1x8x32xf32>
    tpu.vector_store %arg11[%c0_30, %c0_31, %c0_32], %38 {strides = array<i32>} : memref<1x8x32xf32, #tpu.memory_space<vmem>>, vector<1x8x32xf32>,
    return
  }
  func.func @transform_0(%arg0: i32) -> (i32, i32, i32) {
    %c0_i32 = arith.constant 0 : i32
    %c0_i32_0 = arith.constant 0 : i32
    %c0_i32_1 = arith.constant 0 : i32
    return %arg0, %c0_i32, %c0_i32_0 : i32, i32, i32
  }
  func.func @transform_1(%arg0: i32) -> (i32, i32, i32) {
    %c0_i32 = arith.constant 0 : i32
    %c0_i32_0 = arith.constant 0 : i32
    %c0_i32_1 = arith.constant 0 : i32
    return %arg0, %c0_i32, %c0_i32_0 : i32, i32, i32
  }
  func.func @transform_2(%arg0: i32) -> (i32, i32, i32) {
    %c0_i32 = arith.constant 0 : i32
    %c0_i32_0 = arith.constant 0 : i32
    %c0_i32_1 = arith.constant 0 : i32
    return %arg0, %c0_i32, %c0_i32_0 : i32, i32, i32
  }
  func.func @transform_3(%arg0: i32) -> (i32, i32, i32) {
    %c0_i32 = arith.constant 0 : i32
    %c0_i32_0 = arith.constant 0 : i32
    %c0_i32_1 = arith.constant 0 : i32
    return %arg0, %c0_i32, %c0_i32_0 : i32, i32, i32
  }
  func.func @transform_4(%arg0: i32) -> (i32, i32, i32) {
    %c0_i32 = arith.constant 0 : i32
    %c0_i32_0 = arith.constant 0 : i32
    %c0_i32_1 = arith.constant 0 : i32
    return %arg0, %c0_i32, %c0_i32_0 : i32, i32, i32
  }
  func.func @transform_5(%arg0: i32) -> (i32, i32) {
    %c0_i32 = arith.constant 0 : i32
    %c0_i32_0 = arith.constant 0 : i32
    %c0_i32_1 = arith.constant 0 : i32
    return %c0_i32, %c0_i32_0 : i32, i32
  }
  func.func @transform_6(%arg0: i32) -> (i32, i32) {
    %c0_i32 = arith.constant 0 : i32
    %c0_i32_0 = arith.constant 0 : i32
    %c0_i32_1 = arith.constant 0 : i32
    return %c0_i32, %c0_i32_0 : i32, i32
  }
  func.func @transform_7(%arg0: i32) -> (i32, i32) {
    %c0_i32 = arith.constant 0 : i32
    %c0_i32_0 = arith.constant 0 : i32
    %c0_i32_1 = arith.constant 0 : i32
    return %c0_i32, %c0_i32_0 : i32, i32
  }
  func.func @transform_8(%arg0: i32) -> (i32, i32) {
    %c0_i32 = arith.constant 0 : i32
    %c0_i32_0 = arith.constant 0 : i32
    %c0_i32_1 = arith.constant 0 : i32
    return %c0_i32, %c0_i32_0 : i32, i32
  }
  func.func @transform_9(%arg0: i32) -> (i32, i32) {
    %c0_i32 = arith.constant 0 : i32
    %c0_i32_0 = arith.constant 0 : i32
    %c0_i32_1 = arith.constant 0 : i32
    return %c0_i32, %c0_i32_0 : i32, i32
  }
  func.func @transform_10(%arg0: i32) -> (i32, i32, i32) {
    %c0_i32 = arith.constant 0 : i32
    %c0_i32_0 = arith.constant 0 : i32
    %c0_i32_1 = arith.constant 0 : i32
    return %arg0, %c0_i32, %c0_i32_0 : i32, i32, i32
  }
}

</mosaic_0001>

<bundles_post_ra>
// kernel: tpu_custom_call.1
= control target key start
LH: loop header
LB: loop body
LE: loop exit
PB: predicated region body
PF: predicated region fallthrough
CT: control target
= control target key end

     0   :  { %s1904_s0 = inlined_call_operand.hbm [shape: f32[2,8,16], index: 0, kind: input, shape index: {}]   ;;  %s1905_s1 = inlined_call_operand.hbm [shape: f32[2,8,16], index: 1, kind: input, shape index: {}]   ;;  %s1906_s2 = inlined_call_operand.hbm [shape: f32[2,16,32], index: 2, kind: input, shape index: {}]   ;;  %s1907_s3 = inlined_call_operand.hbm [shape: f32[2,16,32], index: 3, kind: input, shape index: {}]   ;;  %s1908_s4 = inlined_call_operand.hbm [shape: f32[2,8,32], index: 4, kind: input, shape index: {}]   ;;  %s1909_s5 = inlined_call_operand.hbm [shape: f32[32,96], index: 5, kind: input, shape index: {}]   ;;  %s1910_s6 = inlined_call_operand.hbm [shape: f32[32,96], index: 6, kind: input, shape index: {}]   ;;  %s1911_s7 = inlined_call_operand.hbm [shape: f32[32,64], index: 7, kind: input, shape index: {}]   ;;  %s1912_s8 = inlined_call_operand.hbm [shape: f32[32,32], index: 8, kind: input, shape index: {}]   ;;  %s1913_s9 = inlined_call_operand.vmem [shape: f32[1,96], index: 9, kind: input, shape index: {}]   ;;  %s1914_s10 = inlined_call_operand.hbm [shape: f32[2,8,32], index: 10, kind: output, shape index: {}]  }
   0x1   :  { %1935 = sst [smem:[#allocation34_spill]] %s1905_s1 }
   0x2   :  { %1936 = sst [smem:[#allocation35_spill]] %s1907_s3 }
   0x3   :  { %1937 = sst [smem:[#allocation36_spill]] %s1909_s5 }
   0x4   :  { %1938 = sst [smem:[#allocation37_spill]] %s1911_s7 }
   0x5   :  { %1939 = sst [smem:[#allocation38_spill]] %s1913_s9 }
   0x6   :  { %1940 = sst [smem:[#allocation39_spill]] %s1914_s10 }
   0x7   :  { %15 = vsyncpa [#allocation3], 0 }
   0x8   :  { %17 = vsyncpa [#allocation3 + $0x1], 0 }
   0x9   :  { %18 = vsyncpa [#allocation6], 0 }
   0xa   :  { %20 = vsyncpa [#allocation6 + $0x1], 0 }
   0xb   :  { %21 = vsyncpa [#allocation9], 0 }
   0xc   :  { %23 = vsyncpa [#allocation9 + $0x1], 0 }
   0xd   :  { %24 = vsyncpa [#allocation12], 0 }
   0xe   :  { %25 = vsyncpa [#allocation15], 0 }
   0xf   :  { %26 = vsyncpa [#allocation4], 0 }
  0x10   :  { %28 = vsyncpa [#allocation4 + $0x1], 0  ;;  %s1597_s13 = smov 0   ;;  %s1599_s14 = smov 0  }
  0x11   :  { %s1601_s15 = smov 0   ;;  %s1603_s16 = smov 0  }
  0x12 LB: > { %1941 = sst [smem:[#allocation24_spill]] %s1520_s13  ;;  %s1618_s17 = sadd.s32 4294967295, %s1532_s16   ;;  %s1532_s16 = sphi %s1603_s16, %s1979_s16   ;;  %s1528_s15 = sphi %s1601_s15, %s1982_s15   ;;  %s1524_s14 = sphi %s1599_s14, %s1981_s14   ;;  %s1520_s13 = sphi %s1597_s13, %s1980_s13  }
  0x13   : > { %1942 = sst [smem:[#allocation25_spill]] %s1524_s14  ;;  %s1019_s18 = sadd.s32 4294967294, %s1532_s16  }
  0x14   : > { %1943 = sst [smem:[#allocation26_spill]] %s1528_s15  ;;  %p54_p0 = scmp.ne.s32.totalorder %s1524_s14, %s1520_s13 }
  0x15   : > { %1944 = sst [smem:[#allocation27_spill]] %s1618_s17  ;;  %p1925_p1 = scmp.eq.s32.totalorder %s1618_s17, 0 }
  0x16   : > { %p287_p2 = scmp.eq.s32.totalorder %s1618_s17, 1  ;;  %p293_p3 = scmp.eq.s32.totalorder %s1019_s18, 1 }
  0x17   : > { %p1627_p4 = por %p1925_p1, %p54_p0  ;;  %p1020_p5 = scmp.ge.s32.totalorder %s1532_s16, 1 }
  0x18   : > { %p1632_p6 = por %p293_p3, %p54_p0  ;;  %p300_p7 = scmp.lt.s32.totalorder %s1532_s16, 3 }
  0x19   : > { %s1945_s19 = scalar_select %p1627_p4, 1, 0 }
  0x1a   : > { %s1947_s20 = scalar_select %p1632_p6, 1, 0 }
  0x1b   : > { %1946 = sst [smem:[#allocation28_spill]] %s1945_s19  ;;  %p1640_p8 = pnand %p1020_p5, %p300_p7 }
  0x1c   : > { %1948 = sst [smem:[#allocation29_spill]] %s1947_s20  ;;  %s1534_s25 = smov [#allocation11]  }
  0x1d   : > { %s1949_s5 = sld [smem:[#allocation36_spill]]  ;;  %p1090_p9 = pneg %p1640_p8 }
  0x1e   : > { %s1950_s24 = scalar_select %p1640_p8, 1, 0 }
  0x1f   : > { %s313_s26 = sshll.u32 %s1534_s25, 4  ;;  %p1648_p10 = pnand %p1090_p9, %p1925_p1  ;;  %s314_s26 = int_to_ptr.vmem [resolvable:$true] %s313_s26 }
  0x20   : > { %1951 = sst [smem:[#allocation30_spill]] %s1950_s24  ;;  %s1915_s11 = smov 128  }
  0x21   : > { %s1953_s7 = sld [smem:[#allocation37_spill]]  ;;  %s1917_s12 = smov 8  }
  0x22   : > { %s1537_s18 = smov [#allocation14]   ;;  %s1667_s22 = sadd.s32 1, %s1532_s16  }
  0x23   : > { %s311_s23 = sshll.u32 %s1949_s5, 4  ;;  %s341_s21 = sshll.u32 %s1537_s18, 4  ;;  %s312_s23 = int_to_ptr.hbm [resolvable:$true] %s311_s23  ;;  %s342_s21 = int_to_ptr.vmem [resolvable:$true] %s341_s21 }
  0x24   : > { %1093 = dma.hbm_to_vmem [thread:$0]  (!%p1648_p10), %s312_s23, 512, %s314_s26, [#allocation12], %s1915_s11, %s1915_s11, %s1917_s12  }
  0x25   : > { %1954 = sst [smem:[#allocation31_spill]] %s1667_s22  ;;  %s41_s25 = sadd.s32 1, %s1528_s15 }
  0x26   : > { %s38_s28 = ssub.s32 %s1532_s16, %s1667_s22  ;;  %p48_p12 = scmp.ne.s32.totalorder %s1528_s15, %s1524_s14 }
  0x27   : > { %s339_s30 = sshll.u32 %s1953_s7, 4  ;;  %p39_p13 = scmp.eq.s32.totalorder %s38_s28, 0  ;;  %s340_s30 = int_to_ptr.hbm [resolvable:$true] %s339_s30 }
  0x28   : > { %1099 = dma.hbm_to_vmem [thread:$0]  (!%p1648_p10), %s340_s30, 512, %s342_s21, [#allocation15], %s1915_s11, %s1915_s11, %s1917_s12  }
  0x29   : > { %p49_p0 = scmp.eq.s32.totalorder %s1532_s16, 0  ;;  %p1677_p3 = por %p287_p2, %p48_p12 }
  0x2a   : > { %p1127_p5 = scmp.lt.s32.totalorder %s1532_s16, 2  ;;  %s1686_s29 = sand.u32 1, %s1528_s15  }
  0x2b   : > { %s1955_s23 = scalar_select %p1677_p3, 1, 0 }
  0x2c   : > { %s1683_s26 = scalar_select %p39_p13, %s1528_s15, %s41_s25  }
  0x2d   : > { %1956 = sst [smem:[#allocation32_spill]] %s1955_s23  ;;  %p50_p7 = por %p49_p0, %p48_p12 }
  0x2e   : > { %1957 = sst [smem:[#allocation33_spill]] %s1683_s26  ;;  %s1689_s30 = sshll.u32 %s1686_s29, 3 }
  0x2f   : > { %s1692_s18 = sshll.u32 %s1532_s16, 3  ;;  %p1694_p9 = pnand %p1127_p5, %p50_p7 }
  0x30   : > { %s1924_s28 = sand.u32 1, %s1532_s16   ;;  %s1959_s1 = sld [smem:[#allocation34_spill]] }
  0x31   : > { %s395_s7 = scalar_lea.vmem [#allocation5], %s1689_s30  ;;  %s1706_s15 = scalar_lea.sflag [#allocation6], %s1924_s28 }
  0x32   : > { %s403_s26 = sshll.u32 %s395_s7, 4  ;;  %p1710_p12 = pneg %p1694_p9  ;;  %s404_s26 = int_to_ptr.vmem [resolvable:$true] %s403_s26 }
  0x36   : > { %s399_s25 = scalar_lea.hbm %s1959_s1, %s1692_s18  ;;  %s1247_s12 = scalar_lea.hbm %s1959_s1, 16 }
  0x37   : > { %s401_s5 = sshll.u32 %s399_s25, 4  ;;  %s402_s5 = int_to_ptr.hbm [resolvable:$true] %s401_s5 }
  0x38   : > { %s1240_s22 = sshra.s32 %s402_s5, 4  ;;  %s1241_s22 = int_to_ptr.hbm [resolvable:$true] %s1240_s22 }
  0x39   : > { %s1242_s20 = scalar_lea.hbm %s1241_s22, 8  ;;  %p1248_p5 = scmp.lt.s32.totalorder %s1241_s22, %s1959_s1 }
  0x3a   : > { %p1243_p2 = scmp.ne.s32.totalorder %s1241_s22, %s1242_s20  ;;  %p1249_p7 = scmp.lt.s32.totalorder %s1247_s12, %s1242_s20 }
  0x3c   : > { %p1245_p13 = pnand %p1710_p12, %p1243_p2  ;;  %p1250_p11 = por %p1249_p7, %p1248_p5 }
  0x3e   : > { %p1246_p0 = pneg %p1245_p13 }
  0x40   : > { %p1251_p1 = pnand %p1250_p11, %p1246_p0 }
  0x42   : > { %1254 = shalt.err (!%p1251_p1)
}
  0x43   : > { %1109 = dma.hbm_to_vmem [thread:$0]  (!%p1694_p9), %s402_s5, 128, %s404_s26, %s1706_s15  }
  0x44   : > { %s1030_s10 = sshll.u32 %s1686_s29, 4  ;;  %s1060_s23 = sshll.u32 %s1532_s16, 4 }
  0x45   : > { %s419_s7 = scalar_lea.hbm %s1906_s2, %s1060_s23  ;;  %s414_s17 = scalar_lea.vmem [#allocation7], %s1030_s10 }
  0x46   : > { %s422_s28 = sshll.u32 %s414_s17, 4  ;;  %s420_s20 = sshll.u32 %s419_s7, 4  ;;  %s1730_s28 = int_to_ptr.vmem [resolvable:$true] %s422_s28  ;;  %s1732_s20 = int_to_ptr.hbm [resolvable:$true] %s420_s20 }
  0x47   : > { %s1961_s3 = sld [smem:[#allocation35_spill]]  ;;  %s436_s5 = scalar_lea.vmem [#allocation8], %s1030_s10 }
  0x48   : > { %s444_s26 = sshll.u32 %s436_s5, 4  ;;  %s325_s11 = sshll.u32 %s1910_s6, 4  ;;  %s445_s26 = int_to_ptr.vmem [resolvable:$true] %s444_s26  ;;  %s326_s11 = int_to_ptr.hbm [resolvable:$true] %s325_s11 }
  0x49   : > { %s1962_s17 = sand.u32 1, %s1532_s16  }
  0x4a   : > { %s1742_s14 = scalar_lea.sflag [#allocation9], %s1962_s17 }
  0x4d   : > { %s441_s25 = scalar_lea.hbm %s1961_s3, %s1060_s23  ;;  %s1277_s22 = scalar_lea.hbm %s1961_s3, 32 }
  0x4e   : > { %s442_s1 = sshll.u32 %s441_s25, 4  ;;  %s443_s1 = int_to_ptr.hbm [resolvable:$true] %s442_s1 }
  0x4f   : > { %s1270_s7 = sshra.s32 %s443_s1, 4  ;;  %s1271_s7 = int_to_ptr.hbm [resolvable:$true] %s1270_s7 }
  0x50   : > { %s1272_s24 = scalar_lea.hbm %s1271_s7, 16  ;;  %p1278_p13 = scmp.lt.s32.totalorder %s1271_s7, %s1961_s3 }
  0x51   : > { %p1273_p1 = scmp.ne.s32.totalorder %s1271_s7, %s1272_s24  ;;  %p1279_p0 = scmp.lt.s32.totalorder %s1277_s22, %s1272_s24 }
  0x53   : > { %p1275_p11 = pnand %p1273_p1, %p1710_p12  ;;  %p1280_p5 = por %p1279_p0, %p1278_p13 }
  0x55   : > { %p1276_p2 = pneg %p1275_p11 }
  0x57   : > { %p1281_p7 = pnand %p1280_p5, %p1276_p2 }
  0x59   : > { %1284 = shalt.err (!%p1281_p7)
}
  0x5a   : > { %s1963_s19 = smov 8   ;;  %s1964_s5 = smov 128  }
  0x5b   : > { %1115 = dma.hbm_to_vmem [thread:$0]  (!%p1694_p9), %s443_s1, 256, %s445_s26, %s1742_s14, %s1964_s5, %s1964_s5, %s1963_s19  }
  0x5c   : > { %s1538_s9 = smov [#allocation13]   ;;  %s353_s23 = sshll.u32 %s1912_s8, 4  ;;  %s354_s23 = int_to_ptr.hbm [resolvable:$true] %s353_s23 }
  0x5d   : > { %s327_s17 = sshll.u32 %s1538_s9, 4  ;;  %s1539_s10 = smov [#allocation16]   ;;  %s328_s17 = int_to_ptr.vmem [resolvable:$true] %s327_s17 }
  0x5e   : > { %1096 = dma.hbm_to_vmem [thread:$0]  (!%p1648_p10), %s326_s11, 512, %s328_s17, [#allocation12], %s1964_s5, %s1964_s5, %s1963_s19  }
  0x5f   : > { %s355_s22 = sshll.u32 %s1539_s10, 4  ;;  %s380_s12 = scalar_lea.hbm %s1904_s0, %s1692_s18  ;;  %s356_s22 = int_to_ptr.vmem [resolvable:$true] %s355_s22 }
  0x60   : > { %1102 = dma.hbm_to_vmem [thread:$0]  (!%p1648_p10), %s354_s23, 512, %s356_s22, [#allocation15], %s1964_s5, %s1964_s5, %s1963_s19  }
  0x61   : > { %s382_s25 = sshll.u32 %s380_s12, 4  ;;  %s376_s9 = scalar_lea.vmem [#allocation2], %s1689_s30  ;;  %s383_s25 = int_to_ptr.hbm [resolvable:$true] %s382_s25 }
  0x62   : > { %s384_s7 = sshll.u32 %s376_s9, 4  ;;  %s373_s24 = scalar_lea.sflag [#allocation3], %s1686_s29  ;;  %s385_s7 = int_to_ptr.vmem [resolvable:$true] %s384_s7 }
  0x63   : > { %s1360_s11 = sshra.s32 %s383_s25, 4  ;;  %s1367_s27 = scalar_lea.hbm %s1904_s0, 16  ;;  %s1361_s11 = int_to_ptr.hbm [resolvable:$true] %s1360_s11 }
  0x64   : > { %s1362_s17 = scalar_lea.hbm %s1361_s11, 8  ;;  %p1368_p10 = scmp.lt.s32.totalorder %s1361_s11, %s1904_s0 }
  0x65   : > { %p1363_p1 = scmp.ne.s32.totalorder %s1361_s11, %s1362_s17  ;;  %p1369_p13 = scmp.lt.s32.totalorder %s1367_s27, %s1362_s17 }
  0x67   : > { %p1365_p11 = pnand %p1363_p1, %p1710_p12  ;;  %p1370_p0 = por %p1369_p13, %p1368_p10 }
  0x69   : > { %p1366_p2 = pneg %p1365_p11 }
  0x6b   : > { %p1371_p5 = pnand %p1370_p0, %p1366_p2 }
  0x6d   : > { %1374 = shalt.err (!%p1371_p5)
}
  0x6e   : > { %1106 = dma.hbm_to_vmem [thread:$0]  (!%p1694_p9), %s383_s25, 128, %s385_s7, %s373_s24  }
  0x6f   : > { %s1390_s29 = sshra.s32 %s1732_s20, 4  ;;  %s1397_s3 = scalar_lea.hbm %s1906_s2, 32  ;;  %s1391_s29 = int_to_ptr.hbm [resolvable:$true] %s1390_s29 }
  0x70   : > { %s1392_s23 = scalar_lea.hbm %s1391_s29, 16  ;;  %p1398_p2 = scmp.lt.s32.totalorder %s1391_s29, %s1906_s2 }
  0x71   : > { %p1393_p7 = scmp.ne.s32.totalorder %s1391_s29, %s1392_s23  ;;  %p1399_p10 = scmp.lt.s32.totalorder %s1397_s3, %s1392_s23 }
  0x73   : > { %p1395_p1 = pnand %p1393_p7, %p1710_p12  ;;  %p1400_p13 = por %p1399_p10, %p1398_p2 }
  0x75   : > { %p1396_p11 = pneg %p1395_p1 }
  0x77   : > { %p1401_p0 = pnand %p1400_p13, %p1396_p11 }
  0x79   : > { %1404 = shalt.err (!%p1401_p0)
}
  0x7a   : > { %1112 = dma.hbm_to_vmem [thread:$0]  (!%p1694_p9), %s1732_s20, 256, %s1730_s28, %s1706_s15, %s1964_s5, %s1964_s5, %s1963_s19  }
  0x7b   : > { %s462_s24 = scalar_lea.hbm %s1908_s4, %s1692_s18  ;;  %s458_s10 = scalar_lea.vmem [#allocation10], %s1689_s30 }
  0x7c   : > { %s464_s17 = sshll.u32 %s462_s24, 4  ;;  %s466_s1 = sshll.u32 %s458_s10, 4  ;;  %s465_s17 = int_to_ptr.hbm [resolvable:$true] %s464_s17  ;;  %s467_s1 = int_to_ptr.vmem [resolvable:$true] %s466_s1 }
  0x7d   : > { %s1420_s27 = sshra.s32 %s465_s17, 4  ;;  %s1427_s15 = scalar_lea.hbm %s1908_s4, 16  ;;  %s1421_s27 = int_to_ptr.hbm [resolvable:$true] %s1420_s27 }
  0x7e   : > { %s1422_s26 = scalar_lea.hbm %s1421_s27, 8  ;;  %p1428_p11 = scmp.lt.s32.totalorder %s1421_s27, %s1908_s4 }
  0x7f   : > { %p1423_p5 = scmp.ne.s32.totalorder %s1421_s27, %s1422_s26  ;;  %p1429_p2 = scmp.lt.s32.totalorder %s1427_s15, %s1422_s26 }
  0x81   : > { %p1425_p7 = pnand %p1423_p5, %p1710_p12  ;;  %p1430_p10 = por %p1429_p2, %p1428_p11 }
  0x83   : > { %p1426_p1 = pneg %p1425_p7 }
  0x85   : > { %p1431_p13 = pnand %p1430_p10, %p1426_p1 }
  0x87   : > { %1434 = shalt.err (!%p1431_p13)
}
  0x88   : > { %1118 = dma.hbm_to_vmem [thread:$0]  (!%p1694_p9), %s465_s17, 128, %s467_s1, %s1742_s14  }
  0x89   : > { %475 = sbr.rel (%p1640_p8) target bundleno = 953 (0x3b9), region = 60  ;;  %s1966_s13 = sld [smem:[#allocation25_spill]] (!%p1640_p8) }
  0x8f   : > { %s1823_s19 = sand.u32 1, %s1966_s13  }
  0x90   : > { %s1826_s5 = sshll.u32 %s1823_s19, 3  ;;  %s478_s22 = scalar_lea.sflag [#allocation3], %s1823_s19 }
  0x91   : > { %s481_s12 = scalar_lea.vmem [#allocation2], %s1826_s5 }
  0x92   : > { %1495 = dma.done.wait (%p1627_p4), %s478_s22, 128  }
  0x93   : > { %1497 = vsyncadd (%p1627_p4), %s478_s22, 4294967168  ;;  %s1968_s14 = sld [smem:[#allocation27_spill]]  ;;  %s491_s9 = scalar_lea.vmem [#allocation5], %s1826_s5 }
  0x99   : > { %s487_s21 = sand.u32 1, %s1968_s14  }
  0x9a   : > { %s488_s3 = scalar_lea.sflag [#allocation6], %s487_s21 }
  0x9b   : > { %1499 = dma.done.wait (%p1627_p4), %s488_s3, 384  }
  0x9c   : > { %1501 = vsyncadd (%p1627_p4), %s488_s3, 4294966912  ;;  %s1041_s11 = sshll.u32 %s1823_s19, 4  ;;  %s508_s7 = scalar_lea.sflag [#allocation9], %s487_s21 }
  0x9d   : > { %s501_s25 = scalar_lea.vmem [#allocation7], %s1041_s11  ;;  %s511_s24 = scalar_lea.vmem [#allocation8], %s1041_s11 }
  0x9e   : > { %1503 = dma.done.wait (%p1627_p4), %s508_s7, 384  }
  0x9f   : > { %1505 = vsyncadd (%p1627_p4), %s508_s7, 4294966912  ;;  %s521_s17 = scalar_lea.vmem [#allocation10], %s1826_s5  ;;  %p1969_p8 = scmp.eq.s32.totalorder %s1968_s14, 0 }
  0xa1   : > { %1507 = dma.done.wait (%p1969_p8), [#allocation12], 1024   ;;  %p1970_p9 = pmov %p1969_p8 }
  0xa2   : > { %p1971_p12 = pmov %p1969_p8 }
  0xa3   : > { %1509 = vsyncadd (%p1970_p9), [#allocation12], 4294966272 }
  0xa4   : > { %1511 = dma.done.wait (%p1971_p12), [#allocation15], 1024   ;;  %p1972_p0 = pmov %p1969_p8 }
  0xa5   : > { %v601_v0 = vld [vmem:[%s501_s25 + $0x8] sm:$0xff]  ;;  %v600_v2 = vld [vmem:[%s501_s25] sm:$0xff]  ;;  %vm602_vm0 = vcmask 130048   ;;  %vm661_vm1 = vcmask 261120   ;;  %s1973_s27 = sld [smem:[#allocation38_spill]]  ;;  %s1540_s26 = smov 64  }
  0xa6   : > { %1513 = vsyncadd (%p1972_p0), [#allocation15], 4294966272  ;;  %v628_v1 = vld [vmem:[%s511_s24 + $0x8] sm:$0xff]  ;;  %620 = vmatpush.msra.mxu0 %v601_v0  ;;  %v627_v3 = vld [vmem:[%s511_s24] sm:$0xff]  ;;  %s1541_s29 = smov 96   ;;  %s1057_s15 = sshll.u32 %s1968_s14, 3 }
  0xa7   : > { %646 = vmatpush.msra.mxu1 %v628_v1  ;;  %v599_v4 = vld [vmem:[%s481_s12] sm:$0xff]  ;;  %v626_v5 = vld [vmem:[%s491_s9] sm:$0xff]  ;;  %s1975_s30 = sld [smem:[#allocation39_spill]]  ;;  %s598_s18 = scalar_lea.vmem [#allocation17], %s1826_s5 }
  0xa8   : > { %v660_v6 = vld [vmem:[#allocation13 + $0x18] sm:$0xff]  ;;  %621 = vmatpush.msra.mxu0 %v600_v2  ;;  %v659_v8 = vld [vmem:[#allocation13 + $0x10] sm:$0xff]  ;;  %v658_v10 = vld [vmem:[#allocation13 + $0x8] sm:$0xff]  ;;  %s822_s22 = sshll.u32 %s598_s18, 4  ;;  %s810_s21 = scalar_lea.sflag [#allocation4], %s1823_s19  ;;  %s823_s22 = int_to_ptr.vmem [resolvable:$true] %s822_s22 }
  0xa9   : > { %v656_v7 = vld [vmem:[#allocation11 + $0x18] sm:$0xff]  ;;  %647 = vmatpush.msra.mxu1 %v627_v3  ;;  %1049 = vmatmul.msk.f32.vlgmr.msra.gmra.mxu0 %vm602_vm0, %v599_v4  ;;  %v655_v9 = vld [vmem:[#allocation11 + $0x10] sm:$0xff]  ;;  %v654_v11 = vld [vmem:[#allocation11 + $0x8] sm:$0xff] }
  0xaa   : > { %1050 = vmatmul.msk.f32.vlgmr.msra.gmra.mxu1 %vm602_vm0, %v626_v5  ;;  %677 = vmatpush.msra.mxu2 %v660_v6  ;;  %v657_v12 = vld [vmem:[#allocation13] sm:$0xff]  ;;  %v716_v14 = vld [vmem:[#allocation14 + $0x18] sm:$0xff]  ;;  %v715_v15 = vld [vmem:[#allocation14 + $0x10] sm:$0xff] }
  0xab   : > { %700 = vmatpush.msra.mxu3 %v656_v7  ;;  %v653_v13 = vld [vmem:[#allocation11] sm:$0xff]  ;;  %732 = vmatpush.msrb.mxu0 %v716_v14  ;;  %v714_v16 = vld [vmem:[#allocation14 + $0x8] sm:$0xff]  ;;  %v1856_v18 = vld [vmem:[%s521_s17] sm:$0xff] }
  0xac   : > { %678 = vmatpush.msra.mxu2 %v659_v8  ;;  %v713_v17 = vld [vmem:[#allocation14] sm:$0xff]  ;;  %v764_v21 = vld [vmem:[#allocation16 + $0x18] sm:$0xff]  ;;  %v763_v22 = vld [vmem:[#allocation16 + $0x10] sm:$0xff] }
  0xad   : > { %701 = vmatpush.msra.mxu3 %v655_v9  ;;  %733 = vmatpush.msrb.mxu0 %v715_v15  ;;  %v762_v23 = vld [vmem:[#allocation16 + $0x8] sm:$0xff]  ;;  %v1173_v24 = vld [vmem:[%s1973_s27] ss:$0 sm:$0xff]  ;;  %v761_v25 = vld [vmem:[#allocation16] sm:$0xff]  ;;  %s820_s13 = scalar_lea.hbm %s1975_s30, %s1057_s15  ;;  %s1470_s5 = scalar_lea.hbm %s1975_s30, 16 }
  0xae   : > { %679 = vmatpush.msra.mxu2 %v658_v10  ;;  %780 = vmatpush.msrb.mxu1 %v764_v21  ;;  %s824_s12 = sshll.u32 %s820_s13, 4  ;;  %s825_s12 = int_to_ptr.hbm [resolvable:$true] %s824_s12 }
  0xaf   : > { %702 = vmatpush.msra.mxu3 %v654_v11  ;;  %734 = vmatpush.msrb.mxu0 %v714_v16  ;;  %s1464_s3 = sshra.s32 %s825_s12, 4  ;;  %s1465_s3 = int_to_ptr.hbm [resolvable:$true] %s1464_s3 }
  0xb0   : > { %680 = vmatpush.msra.mxu2 %v657_v12  ;;  %781 = vmatpush.msrb.mxu1 %v763_v22  ;;  %s1466_s9 = scalar_lea.hbm %s1465_s3, 8  ;;  %p1471_p1 = scmp.lt.s32.totalorder %s1465_s3, %s1975_s30 }
  0xb1   : > { %703 = vmatpush.msra.mxu3 %v653_v13  ;;  %735 = vmatpush.msrb.mxu0 %v713_v17  ;;  %p1467_p4 = scmp.ne.s32.totalorder %s1465_s3, %s1466_s9  ;;  %p1472_p11 = scmp.lt.s32.totalorder %s1470_s5, %s1466_s9 }
  0xb2   : > { %1053 = vmatmul.msk.f32.vlgmr.msrb.gmra.mxu0 %vm661_vm1, %v1856_v18  ;;  %782 = vmatpush.msrb.mxu1 %v762_v23 }
  0xb3   : > { %p1468_p5 = pnand %p1467_p4, %p1677_p3  ;;  %p1473_p2 = por %p1472_p11, %p1471_p1 }
  0xb4   : > { %783 = vmatpush.msrb.mxu1 %v761_v25 }
  0xb5   : > { %p1469_p7 = pneg %p1468_p5 }
  0xb7   : > { %p1474_p10 = pnand %p1473_p2, %p1469_p7 }
 0x126   : > { %v623_v19 = vpop.f32.mrf.mxu0 }
 0x127   : > { %v649_v20 = vpop.f32.mrf.mxu1  ;;  %1052 = vmatmul.msk.f32.vlgmr.msra.gmra.mxu3 %vm661_vm1, %v623_v19 }
 0x128   : > { %1051 = vmatmul.msk.f32.vlgmr.msra.gmra.mxu2 %vm661_vm1, %v649_v20 }
 0x12f   : > { %v737_v29 = vpop.f32.mrf.mxu0 }
 0x1aa   : > { %v705_v27 = vpop.f32.mrf.mxu3 }
 0x1ab   : > { %v682_v26 = vpop.f32.mrf.mxu2 }
 0x1ac   : > { %v706_v28 = vadd.f32 %v705_v27, %v682_v26 }
 0x1ae   : > { %v712_v30 = vadd.f32 %v1173_v24, %v706_v28 }
 0x1b0   : > { %v740_v31 = vadd.f32 %v737_v29, %v712_v30 }
 0x1b2   : > { %v1054_v32 = vmul.f32 -1.442695, %v740_v31 }
 0x1b4   : > { %1174 = vpow2.f32 %v1054_v32 }
 0x1ba   : > { %v1175_v33 = vpop.eup %1174 }
 0x1bb   : > { %v744_v34 = vadd.f32 1.0, %v1175_v33 }
 0x1bd   : > { %1176 = vrcp.f32 %v744_v34  ;;  %v756_v38 = vand.u32 2147483648, %v744_v34  ;;  %v754_v40 = vand.u32 2147483647, %v744_v34  ;;  %vm750_vm3 = vweird.f32 %v744_v34 }
 0x1bf   : > { %v757_v42 = vor.u32 1.1754944e-38, %v756_v38  ;;  %vm755_vm5 = vcmp.eq.f32.partialorder %v754_v40, 8.507059e+37 }
 0x1c3   : > { %v1177_v35 = vpop.eup %1176 }
 0x1c4   : > { %v746_v36 = vmul.f32 %v1177_v35, %v744_v34  ;;  %vm751_vm2 = vweird.f32 %v1177_v35 }
 0x1c5   : > { %vm752_vm4 = vmor %vm750_vm3, %vm751_vm2 }
 0x1c6   : > { %v747_v37 = vsub.f32 1.0, %v746_v36 }
 0x1c8   : > { %v748_v39 = vmul.f32 %v1177_v35, %v747_v37 }
 0x1ca   : > { %v749_v41 = vadd.f32 %v1177_v35, %v748_v39 }
 0x1cc   : > { %v753_v43 = vsel %vm752_vm4, %v1177_v35, %v749_v41 }
 0x1cd   : > { %v758_v44 = vsel %vm755_vm5, %v757_v42, %v753_v43 }
 0x1ce   : > { %v760_v45 = vmul.f32 %v758_v44, %v1856_v18 }
 0x1d0   : > { %1055 = vmatmul.msk.f32.vlgmr.msrb.gmra.mxu1 %vm661_vm1, %v760_v45 }
 0x24d   : > { %v785_v46 = vpop.f32.mrf.mxu1 }
 0x24e   : > { %789 = vrot.lane.b32.xlu0 %v785_v46, %s1540_s26 }
 0x256   : > { %794 = vrot.lane.b32.xlu0 %v1856_v18, %s1540_s26 }
 0x2c0   : > { %v790_v47 = vpop.permute.xlu0 %789 }
 0x2c1   : > { %v792_v48 = vadd.f32 %v790_v47, %v712_v30 }
 0x2c3   : > { %1178 = vtanh.f32 %v792_v48 }
 0x2c8   : > { %v795_v49 = vpop.permute.xlu0 %794 }
 0x2c9   : > { %v1179_v50 = vpop.eup %1178 }
 0x2ca   : > { %v797_v51 = vsub.f32 %v1179_v50, %v795_v49 }
 0x2cc   : > { %799 = vrot.lane.b32.xlu1 %v797_v51, %s1541_s29 }
 0x33e   : > { %v800_v52 = vpop.permute.xlu1 %799 }
 0x33f   : > { %v802_v53 = vmul.f32 %v800_v52, %v758_v44 }
 0x341   : > { %804 = vrot.lane.b32.xlu1 %v802_v53, %s1541_s29 }
 0x3b3   : > { %v805_v54 = vpop.permute.xlu1 %804 }
 0x3b4   : > { %v807_v55 = vadd.f32 %v805_v54, %v1856_v18 }
 0x3b6   : > { %808 = vst.msk [vmem:[%s598_s18] sm:$0xff] %vm661_vm1, %v807_v55 }
 0x3b7   : > { %1477 = shalt.err (!%p1474_p10)
}
 0x3b8   : > { %1088 = dma.vmem_to_hbm [thread:$0]  (%p1677_p3), %s823_s22, 128, %s825_s12, %s810_s21  }
 0x3b9 PF: > { %s1976_s19 = sld [smem:[#allocation24_spill]]  ;;  %p1978_p13 = scmp.ge.s32.totalorder %s1532_s16, 2 }
 0x3bb   : > { %p1120_p8 = pnand %p1978_p13, %p1632_p6 }
 0x3bd   : > { %p1121_p9 = pneg %p1120_p8 }
 0x3bf   : > { %s836_s17 = sand.u32 1, %s1976_s19  }
 0x3c0   : > { %s837_s10 = scalar_lea.sflag [#allocation4], %s836_s17 }
 0x3c1   : > { %1515 = dma.done.wait (%p1121_p9), %s837_s10, 128  }
 0x3c2   : > { %1517 = vsyncadd (%p1121_p9), %s837_s10, 4294967168  ;;  %s1979_s16 = sld [smem:[#allocation31_spill]] }
 0x3c3   : > { %s1980_s13 = sld [smem:[#allocation25_spill]] }
 0x3c4   : > { %s1981_s14 = sld [smem:[#allocation26_spill]] }
 0x3c5   : > { %s1982_s15 = sld [smem:[#allocation33_spill]] }
 0x3c8   : > { %p31_p12 = scmp.ge.s32.totalorder %s1979_s16, 4  }
 0x3ca   :  { %33 = sbr.rel (!%p31_p12) target bundleno = 18 (0x12), region = 169 }
 0x3cf   :  { %843 = vsyncpa [#allocation3], 1 }
 0x3d0   :  { %845 = vsyncpa [#allocation3 + $0x1], 1 }
 0x3d1   :  { %846 = vsyncpa [#allocation6], 1 }
 0x3d2   :  { %848 = vsyncpa [#allocation6 + $0x1], 1 }
 0x3d3   :  { %849 = vsyncpa [#allocation9], 1 }
 0x3d4   :  { %851 = vsyncpa [#allocation9 + $0x1], 1 }
 0x3d5   :  { %852 = vsyncpa [#allocation12], 1 }
 0x3d6   :  { %853 = vsyncpa [#allocation15], 1 }
 0x3d7   :  { %854 = vsyncpa [#allocation4], 1 }
 0x3d8   :  { %856 = vsyncpa [#allocation4 + $0x1], 1 }

</bundles_post_ra>
